<compile_context>
chip_gen: v5e
topology: v5e:2x2
jax: 0.10.0
libtpu: 0.0.40
codegen_flags: <defaults>
</compile_context>

<pallas_src>
import functools

import jax
import jax.numpy as jnp
from jax.experimental import pallas as pl
from jax.experimental.pallas import tpu as pltpu

_MAX_NB = 8                    # max batch elements folded into one fused grid step
_MIB = 1024 * 1024
_STEP_OVERHEAD_S = 0.35e-6     # per-grid-step pipeline overhead
_AMORTIZE_FACTOR = 10.0        # want step time >= 10x the step overhead

# Single-buffer grid-invariant weight operands (reclaims VMEM on v7x). Flipped
# off at runtime if this JAX/Mosaic version rejects pipeline_mode=pl.Buffered(1).
_SINGLE_BUFFER_WEIGHTS = True


def _vmem_capacity_bytes():
    """Physical VMEM per TensorCore; conservative (v7x, 64 MiB) if unknown."""
    try:
        info = pltpu.get_tpu_info()
        for attr in ("vmem_capacity_bytes", "vmem_size_bytes", "vmem_bytes"):
            val = getattr(info, attr, None)
            if val:
                return int(val)
    except Exception:
        pass
    return 64 * _MIB


def _hbm_bw_bytes_per_s():
    """Per-TensorCore HBM bandwidth estimate (only used to pick nb)."""
    try:
        info = pltpu.get_tpu_info()
        for attr in ("hbm_bandwidth_bytes_per_second", "hbm_bandwidth_bytes_per_s",
                     "membw_bytes_per_s"):
            val = getattr(info, attr, None)
            if val:
                return float(val)
        ver = str(getattr(info, "chip_version", "")).lower()
        if "7" in ver:
            return 3.2e12
        if "6" in ver:
            return 1.35e12
        if "5" in ver:
            return 0.8e12
    except Exception:
        pass
    return 1.35e12


def _grid_invariant_spec(block_shape, index_map, single_buffer):
    """BlockSpec for a grid-invariant operand (constant index_map). When
    supported, single-buffer it: double-buffering a constant block is pure VMEM
    waste (significant for large C on v7x's 64 MiB VMEM)."""
    if single_buffer:
        return pl.BlockSpec(block_shape, index_map, pipeline_mode=pl.Buffered(1))
    return pl.BlockSpec(block_shape, index_map)


def _run_with_weight_spec_fallback(build_and_call):
    """Run build_and_call(single_buffer_weights). If single-buffered weight specs
    are rejected by this JAX/Mosaic version, fall back (once, globally) to plain
    double-buffered weight specs. Genuine kernel errors still surface."""
    global _SINGLE_BUFFER_WEIGHTS
    if _SINGLE_BUFFER_WEIGHTS:
        try:
            return build_and_call(True)
        except Exception:
            _SINGLE_BUFFER_WEIGHTS = False
    return build_and_call(False)


def _se_fused_kernel(x_ref, wa_ref, wb_ref, o_ref):
    """Pool + fc1 + ReLU + fc2 + sigmoid + rescale for nb batch elements.

    x_ref / o_ref: (nb, C, HW) in native NCHW(-flattened) layout.
    wa_ref: (Cr, C), wb_ref: (C, Cr).
    """
    nb = x_ref.shape[0]
    # Weights loaded / upcast once per grid step.
    wa = wa_ref[...].astype(jnp.float32)                                    # (Cr, C)
    wb = wb_ref[...].astype(jnp.float32)                                    # (C, Cr)

    # f32-accumulated spatial means, one (C, 1) per batch element. Each x_ref[n]
    # load feeds only its own reduction (short live range -> no full-slab VMEM
    # temporary spanning pool and rescale).
    means = [jnp.mean(x_ref[n], axis=-1, keepdims=True, dtype=jnp.float32)
             for n in range(nb)]
    s = means[0] if nb == 1 else jnp.concatenate(means, axis=-1)            # (C, nb)

    # Batched excite: two small matmuls + one sigmoid for all nb elements
    # (instead of 2*nb width-1 matvecs).
    h = jnp.maximum(jnp.dot(wa, s, preferred_element_type=jnp.float32), 0.0)  # (Cr, nb)
    g = jax.nn.sigmoid(jnp.dot(wb, h, preferred_element_type=jnp.float32))    # (C, nb)

    for n in range(nb):                              # static unroll, nb <= _MAX_NB
        # f32 multiply (gate stays f32), single cast on the store. Gate broadcasts
        # over HW lanes; separate x_ref[n] load streams from the input buffer.
        o_ref[n] = (x_ref[n] * g[:, n:n + 1]).astype(o_ref.dtype)


def _se_two_pass_kernel(x_ref, wa_ref, wb_ref, o_ref, acc_ref, gate_ref, *,
                        inv_hw, thw, hw_total, needs_mask):
    """Spill path, grid (N, 2, K): pass p=0 accumulates the spatial sum over HW
    chunks and computes the gate into VMEM scratch at the last chunk; pass p=1
    rescales the same chunks. The gate never touches HBM."""
    p = pl.program_id(1)
    k = pl.program_id(2)

    @pl.when((p == 0) & (k == 0))
    def _():
        acc_ref[...] = jnp.zeros_like(acc_ref)

    @pl.when(p == 0)
    def _():
        x = x_ref[0]                                                         # (C, thw)
        if needs_mask:
            # Non-dividing HW: zero the padded tail lanes of the last chunk.
            lane = jax.lax.broadcasted_iota(jnp.int32, x.shape, 1)
            x = jnp.where(lane < (hw_total - k * thw), x, jnp.zeros_like(x))
        acc_ref[...] += jnp.sum(x, axis=-1, keepdims=True, dtype=jnp.float32)

    @pl.when((p == 0) & (k == pl.num_programs(2) - 1))
    def _():
        s = acc_ref[...] * inv_hw                                            # (C, 1)
        h = jnp.maximum(
            jnp.dot(wa_ref[...].astype(jnp.float32), s,
                    preferred_element_type=jnp.float32), 0.0)                # (Cr, 1)
        gate_ref[...] = jax.nn.sigmoid(
            jnp.dot(wb_ref[...].astype(jnp.float32), h,
                    preferred_element_type=jnp.float32))                     # (C, 1)

    @pl.when(p == 1)
    def _():
        o_ref[0] = (x_ref[0] * gate_ref[...]).astype(o_ref.dtype)


def _pick_nb(N, slab_bytes, weight_bytes, budget, target_step_bytes):
    """Smallest nb (dividing N, fitting VMEM) whose per-step HBM traffic
    amortizes the per-step overhead, while keeping the grid >= 4 (>= 2) steps
    so both v7x TensorCores get work and the DMA pipeline overlaps."""
    divisors = [d for d in range(1, min(N, _MAX_NB) + 1) if N % d == 0]
    # 5x slab: in + out double-buffered + elementwise-temporary headroom.
    feasible = [d for d in divisors if 5 * d * slab_bytes + weight_bytes <= budget]
    if not feasible:
        return None
    cands = feasible
    for min_steps in (4, 2):
        sub = [d for d in feasible if N // d >= min_steps]
        if sub:
            cands = sub
            break
    amortized = [d for d in cands if 2 * d * slab_bytes >= target_step_bytes]
    return min(amortized) if amortized else max(cands)


def se_module(x, w1, w2, *, force_two_pass=False, hw_block=None):
    """SE forward. x: (N, C, H, W) NCHW; w1: (C//r, C); w2: (C, C//r)."""
    N, C, H, W = x.shape
    HW = H * W
    Cr = w1.shape[0]
    itemsize = jnp.dtype(x.dtype).itemsize

    cap = _vmem_capacity_bytes()
    budget = int(0.70 * cap)
    raw_weight_bytes = (w1.size * jnp.dtype(w1.dtype).itemsize
                        + w2.size * jnp.dtype(w2.dtype).itemsize)
    slab_bytes = C * HW * itemsize
    target_step_bytes = _AMORTIZE_FACTOR * _STEP_OVERHEAD_S * _hbm_bw_bytes_per_s()

    x_flat = x.reshape(N, C, HW)          # free: contiguous trailing-dim reshape

    nb = None if force_two_pass else _pick_nb(
        N, slab_bytes, 2 * raw_weight_bytes, budget, target_step_bytes)

    if nb is not None:
        # ---------------- Fused single-pass path (2x HBM traffic) ----------------
        # Native NCHW blocks; no wrapper-side transposes. HW % 128 != 0 only means
        # masked tail stores, far cheaper than extra HBM traversals.
        def run(single_buf):
            wfac = 1 if single_buf else 2
            footprint = 5 * nb * slab_bytes + wfac * raw_weight_bytes
            vmem_limit = int(min(max(footprint * 5 // 4 + _MIB, 32 * _MIB),
                                 int(0.95 * cap)))
            return pl.pallas_call(
                _se_fused_kernel,
                out_shape=jax.ShapeDtypeStruct((N, C, HW), x.dtype),
                grid_spec=pltpu.PrefetchScalarGridSpec(
                    num_scalar_prefetch=0,
                    grid=(N // nb,),
                    in_specs=[
                        pl.BlockSpec((nb, C, HW), lambda i: (i, 0, 0)),
                        _grid_invariant_spec((Cr, C), lambda i: (0, 0), single_buf),
                        _grid_invariant_spec((C, Cr), lambda i: (0, 0), single_buf),
                    ],
                    out_specs=pl.BlockSpec((nb, C, HW), lambda i: (i, 0, 0)),
                ),
                compiler_params=pltpu.CompilerParams(
                    dimension_semantics=("parallel",),
                    vmem_limit_bytes=vmem_limit),
                cost_estimate=pl.CostEstimate(
                    flops=int(N * (2 * C * HW + 4 * C * Cr)),
                    transcendentals=int(N * C),
                    bytes_accessed=int(2 * N * C * HW * itemsize + raw_weight_bytes)),
            )(x_flat, w1, w2)

        out = _run_with_weight_spec_fallback(run)
        return out.reshape(N, C, H, W)

    # ------- Spill path: single fused two-pass call (3x HBM traffic, bounded VMEM) -------
    if hw_block is not None:
        thw = int(hw_block)
        assert thw == HW or thw % 128 == 0, "hw_block must be a multiple of 128 (or HW)"
    elif HW <= 128:
        thw = HW
    else:
        lanes_fit = int((budget - 2 * raw_weight_bytes) // max(1, 5 * C * itemsize))
        thw = max(128, (min(lanes_fit, HW) // 128) * 128)
    k_steps = pl.cdiv(HW, thw)          # non-dividing HW handled with a masked tail
    needs_mask = (HW % thw) != 0

    # TODO(synk): for N < num_cores on v7x, split the HW reduction across cores
    # (per-core partial sums + tiny epilogue) instead of leaving one core idle.
    def run(single_buf):
        wfac = 1 if single_buf else 2
        footprint = 5 * C * thw * itemsize + wfac * raw_weight_bytes + 8 * C
        vmem_limit = int(min(max(footprint * 5 // 4 + _MIB, 32 * _MIB),
                             int(0.95 * cap)))
        kernel = functools.partial(
            _se_two_pass_kernel, inv_hw=1.0 / float(HW), thw=thw,
            hw_total=HW, needs_mask=needs_mask)
        return pl.pallas_call(
            kernel,
            out_shape=jax.ShapeDtypeStruct((N, C, HW), x.dtype),
            grid_spec=pltpu.PrefetchScalarGridSpec(
                num_scalar_prefetch=0,
                grid=(N, 2, k_steps),
                in_specs=[
                    pl.BlockSpec((1, C, thw), lambda n, p, k: (n, 0, k)),
                    _grid_invariant_spec((Cr, C), lambda n, p, k: (0, 0), single_buf),
                    _grid_invariant_spec((C, Cr), lambda n, p, k: (0, 0), single_buf),
                ],
                # Park the output on chunk 0 during the pooling pass (p=0) so no
                # garbage block is ever written back; track the chunks at p=1.
                out_specs=pl.BlockSpec((1, C, thw), lambda n, p, k: (n, 0, k * p)),
                scratch_shapes=[pltpu.VMEM((C, 1), jnp.float32),   # running sum
                                pltpu.VMEM((C, 1), jnp.float32)],  # gate
            ),
            compiler_params=pltpu.CompilerParams(
                dimension_semantics=("parallel", "arbitrary", "arbitrary"),
                vmem_limit_bytes=vmem_limit),
            cost_estimate=pl.CostEstimate(
                flops=int(N * (2 * C * HW + 4 * C * Cr)),
                transcendentals=int(N * C),
                bytes_accessed=int(3 * N * C * HW * itemsize + raw_weight_bytes)),
        )(x_flat, w1, w2)

    out = _run_with_weight_spec_fallback(run)
    return out.reshape(N, C, H, W)


def _reference(x, w1, w2):
    s = jnp.mean(x, axis=(2, 3))                    # (N, C)
    h = jnp.maximum(s @ w1.T, 0.0)                  # (N, Cr)
    g = jax.nn.sigmoid(h @ w2.T)                    # (N, C)
    return x * g[:, :, None, None]


if __name__ == "__main__":
    key = jax.random.PRNGKey(0)

    def check(name, x, w1, w2, **kw):
        out = se_module(x, w1, w2, **kw)
        jax.block_until_ready(out)
        ref = _reference(x, w1, w2)
        assert out.shape == x.shape and out.dtype == x.dtype, name
        assert jnp.allclose(out, ref, atol=1e-5, rtol=1e-5), f"{name} mismatch"

    # 1) Fused path at the spec's small shape (N=2, C=4, 16x16), PyTorch-style init.
    N, C, H, W, red = 2, 4, 16, 16, 2
    Cr = C // red
    kx, k1, k2, key = jax.random.split(key, 4)
    x = jax.random.normal(kx, (N, C, H, W), dtype=jnp.float32)
    bound1 = (6.0 / (C + Cr)) ** 0.5                      # xavier_uniform_ (fc1)
    w1 = jax.random.uniform(k1, (Cr, C), minval=-bound1, maxval=bound1,
                            dtype=jnp.float32)
    bound2 = 1.0 / (Cr ** 0.5)                            # Conv2d default init (fc2)
    w2 = jax.random.uniform(k2, (C, Cr), minval=-bound2, maxval=bound2,
                            dtype=jnp.float32)
    check("fused", x, w1, w2)

    # 2) Forced spill path (single fused two-pass call), dividing HW chunks.
    check("two-pass", x, w1, w2, force_two_pass=True, hw_block=128)

    # 3) Fused path with HW = 7*7 = 49 (not a multiple of 128): masked tail
    #    stores in-kernel, no wrapper-side transposes.
    kx, k1, k2, key = jax.random.split(key, 4)
    C3, H3, W3, Cr3 = 128, 7, 7, 32
    x3 = jax.random.normal(kx, (2, C3, H3, W3), dtype=jnp.float32)
    w13 = jax.random.uniform(k1, (Cr3, C3), minval=-0.1, maxval=0.1, dtype=jnp.float32)
    w23 = jax.random.uniform(k2, (C3, Cr3), minval=-0.1, maxval=0.1, dtype=jnp.float32)
    check("fused-hw49", x3, w13, w23)

    # 4) Fused path with N=8 -> nb=2 per step (batched gate matmuls, grid of 4).
    kx, key = jax.random.split(key)
    x4 = jax.random.normal(kx, (8, C, H, W), dtype=jnp.float32)
    check("fused-nb2", x4, w1, w2)

    # 5) Spill path with non-dividing HW (10*13 = 130): masked pooling tail.
    kx, k1, k2, key = jax.random.split(key, 4)
    C5, Cr5 = 8, 4
    x5 = jax.random.normal(kx, (1, C5, 10, 13), dtype=jnp.float32)
    w15 = jax.random.uniform(k1, (Cr5, C5), minval=-0.2, maxval=0.2, dtype=jnp.float32)
    w25 = jax.random.uniform(k2, (C5, Cr5), minval=-0.2, maxval=0.2, dtype=jnp.float32)
    check("two-pass-masked", x5, w15, w25, force_two_pass=True)

    print("KERNEL_OK")
</pallas_src>

<mosaic_0001>
module attributes {stable_mosaic.version = 11 : i64} {
  func.func @_se_fused_kernel(%arg0: i32, %arg1: memref<1x4x256xf32, #tpu.memory_space<vmem>>, %arg2: memref<2x4xf32, #tpu.memory_space<vmem>>, %arg3: memref<4x2xf32, #tpu.memory_space<vmem>>, %arg4: memref<1x4x256xf32, #tpu.memory_space<vmem>>) attributes {dimension_semantics = [#tpu.dimension_semantics<parallel>], iteration_bounds = array<i64: 2>, scalar_prefetch = 0 : i64, scratch_operands = 0 : i64, tpu.core_type = #tpu.core_type<tc>, window_params = [{transform_indices = @transform_0, window_bounds = array<i64: 1, 4, 256>}, {pipeline_mode = #tpu.pipeline_mode<synchronous>, transform_indices = @transform_1, window_bounds = array<i64: 2, 4>}, {pipeline_mode = #tpu.pipeline_mode<synchronous>, transform_indices = @transform_2, window_bounds = array<i64: 4, 2>}, {transform_indices = @transform_3, window_bounds = array<i64: 1, 4, 256>}]} {
    %c0 = arith.constant 0 : index
    %c0_0 = arith.constant 0 : index
    %0 = vector.load %arg2[%c0, %c0_0] : memref<2x4xf32, #tpu.memory_space<vmem>>, vector<2x4xf32>
    %c0_1 = arith.constant 0 : index
    %c0_2 = arith.constant 0 : index
    %1 = vector.load %arg3[%c0_1, %c0_2] : memref<4x2xf32, #tpu.memory_space<vmem>>, vector<4x2xf32>
    %c0_3 = arith.constant 0 : index
    %c0_4 = arith.constant 0 : index
    %c0_5 = arith.constant 0 : index
    %2 = vector.load %arg1[%c0_3, %c0_4, %c0_5] : memref<1x4x256xf32, #tpu.memory_space<vmem>>, vector<1x4x256xf32>
    %3 = vector.shape_cast %2 : vector<1x4x256xf32> to vector<4x256xf32>
    %cst = arith.constant dense<0.000000e+00> : vector<4xf32>
    %4 = vector.multi_reduction <add>, %3, %cst [1] : vector<4x256xf32> to vector<4xf32>
    %5 = vector.shape_cast %4 : vector<4xf32> to vector<4x1xf32>
    %cst_6 = arith.constant 2.560000e+02 : f32
    %6 = vector.broadcast %cst_6 : f32 to vector<4x1xf32>
    %7 = arith.divf %5, %6 : vector<4x1xf32>
    %cst_7 = arith.constant dense<0.000000e+00> : vector<2x1xf32>
    %8 = tpu.matmul %0, %7, %cst_7 {dimension_numbers = #tpu.dot_dimension_numbers<[1], [0], [0], [1], [0, 0, 1, 1], [], []>} : vector<2x4xf32>, vector<4x1xf32>, vector<2x1xf32> -> vector<2x1xf32>
    %cst_8 = arith.constant 0.000000e+00 : f32
    %9 = vector.broadcast %cst_8 : f32 to vector<2x1xf32>
    %10 = arith.maximumf %8, %9 : vector<2x1xf32>
    %cst_9 = arith.constant dense<0.000000e+00> : vector<4x1xf32>
    %11 = tpu.matmul %1, %10, %cst_9 {dimension_numbers = #tpu.dot_dimension_numbers<[1], [0], [0], [1], [0, 0, 1, 1], [], []>} : vector<4x2xf32>, vector<2x1xf32>, vector<4x1xf32> -> vector<4x1xf32>
    %12 = arith.negf %11 : vector<4x1xf32>
    %13 = math.exp %12 : vector<4x1xf32>
    %cst_10 = arith.constant 1.000000e+00 : f32
    %14 = vector.broadcast %cst_10 : f32 to vector<4x1xf32>
    %15 = arith.addf %14, %13 : vector<4x1xf32>
    %16 = arith.divf %14, %15 : vector<4x1xf32>
    %c0_11 = arith.constant 0 : index
    %c0_12 = arith.constant 0 : index
    %c0_13 = arith.constant 0 : index
    %17 = vector.load %arg1[%c0_11, %c0_12, %c0_13] : memref<1x4x256xf32, #tpu.memory_space<vmem>>, vector<1x4x256xf32>
    %18 = vector.shape_cast %17 : vector<1x4x256xf32> to vector<4x256xf32>
    %19 = vector.broadcast %16 : vector<4x1xf32> to vector<4x256xf32>
    %20 = arith.mulf %18, %19 : vector<4x256xf32>
    %c0_14 = arith.constant 0 : index
    %c0_15 = arith.constant 0 : index
    %c0_16 = arith.constant 0 : index
    %21 = vector.load %arg4[%c0_14, %c0_15, %c0_16] : memref<1x4x256xf32, #tpu.memory_space<vmem>>, vector<1x4x256xf32>
    %22 = vector.shape_cast %21 : vector<1x4x256xf32> to vector<4x256xf32>
    %23 = vector.shape_cast %20 : vector<4x256xf32> to vector<1x4x256xf32>
    tpu.vector_store %arg4[%c0_14, %c0_15, %c0_16], %23 {strides = array<i32>} : memref<1x4x256xf32, #tpu.memory_space<vmem>>, vector<1x4x256xf32>,
    return
  }
  func.func @transform_0(%arg0: i32) -> (i32, i32, i32) {
    %c0_i32 = arith.constant 0 : i32
    %c0_i32_0 = arith.constant 0 : i32
    %c0_i32_1 = arith.constant 0 : i32
    return %arg0, %c0_i32, %c0_i32_0 : i32, i32, i32
  }
  func.func @transform_1(%arg0: i32) -> (i32, i32) {
    %c0_i32 = arith.constant 0 : i32
    %c0_i32_0 = arith.constant 0 : i32
    %c0_i32_1 = arith.constant 0 : i32
    return %c0_i32, %c0_i32_0 : i32, i32
  }
  func.func @transform_2(%arg0: i32) -> (i32, i32) {
    %c0_i32 = arith.constant 0 : i32
    %c0_i32_0 = arith.constant 0 : i32
    %c0_i32_1 = arith.constant 0 : i32
    return %c0_i32, %c0_i32_0 : i32, i32
  }
  func.func @transform_3(%arg0: i32) -> (i32, i32, i32) {
    %c0_i32 = arith.constant 0 : i32
    %c0_i32_0 = arith.constant 0 : i32
    %c0_i32_1 = arith.constant 0 : i32
    return %arg0, %c0_i32, %c0_i32_0 : i32, i32, i32
  }
}

module attributes {stable_mosaic.version = 11 : i64} {
  func.func @_se_fused_kernel(%arg0: i32, %arg1: memref<1x4x256xf32, #tpu.memory_space<vmem>>, %arg2: memref<2x4xf32, #tpu.memory_space<vmem>>, %arg3: memref<4x2xf32, #tpu.memory_space<vmem>>, %arg4: memref<1x4x256xf32, #tpu.memory_space<vmem>>) attributes {dimension_semantics = [#tpu.dimension_semantics<parallel>], iteration_bounds = array<i64: 2>, scalar_prefetch = 0 : i64, scratch_operands = 0 : i64, tpu.core_type = #tpu.core_type<tc>, window_params = [{transform_indices = @transform_0, window_bounds = array<i64: 1, 4, 256>}, {pipeline_mode = #tpu.pipeline_mode<synchronous>, transform_indices = @transform_1, window_bounds = array<i64: 2, 4>}, {pipeline_mode = #tpu.pipeline_mode<synchronous>, transform_indices = @transform_2, window_bounds = array<i64: 4, 2>}, {transform_indices = @transform_3, window_bounds = array<i64: 1, 4, 256>}]} {
    %c0 = arith.constant 0 : index
    %c0_0 = arith.constant 0 : index
    %0 = vector.load %arg2[%c0, %c0_0] : memref<2x4xf32, #tpu.memory_space<vmem>>, vector<2x4xf32>
    %c0_1 = arith.constant 0 : index
    %c0_2 = arith.constant 0 : index
    %1 = vector.load %arg3[%c0_1, %c0_2] : memref<4x2xf32, #tpu.memory_space<vmem>>, vector<4x2xf32>
    %c0_3 = arith.constant 0 : index
    %c0_4 = arith.constant 0 : index
    %c0_5 = arith.constant 0 : index
    %2 = vector.load %arg1[%c0_3, %c0_4, %c0_5] : memref<1x4x256xf32, #tpu.memory_space<vmem>>, vector<1x4x256xf32>
    %3 = vector.shape_cast %2 : vector<1x4x256xf32> to vector<4x256xf32>
    %cst = arith.constant dense<0.000000e+00> : vector<4xf32>
    %4 = vector.multi_reduction <add>, %3, %cst [1] : vector<4x256xf32> to vector<4xf32>
    %5 = vector.shape_cast %4 : vector<4xf32> to vector<4x1xf32>
    %cst_6 = arith.constant 2.560000e+02 : f32
    %6 = vector.broadcast %cst_6 : f32 to vector<4x1xf32>
    %7 = arith.divf %5, %6 : vector<4x1xf32>
    %cst_7 = arith.constant dense<0.000000e+00> : vector<2x1xf32>
    %8 = tpu.matmul %0, %7, %cst_7 {dimension_numbers = #tpu.dot_dimension_numbers<[1], [0], [0], [1], [0, 0, 1, 1], [], []>} : vector<2x4xf32>, vector<4x1xf32>, vector<2x1xf32> -> vector<2x1xf32>
    %cst_8 = arith.constant 0.000000e+00 : f32
    %9 = vector.broadcast %cst_8 : f32 to vector<2x1xf32>
    %10 = arith.maximumf %8, %9 : vector<2x1xf32>
    %cst_9 = arith.constant dense<0.000000e+00> : vector<4x1xf32>
    %11 = tpu.matmul %1, %10, %cst_9 {dimension_numbers = #tpu.dot_dimension_numbers<[1], [0], [0], [1], [0, 0, 1, 1], [], []>} : vector<4x2xf32>, vector<2x1xf32>, vector<4x1xf32> -> vector<4x1xf32>
    %12 = arith.negf %11 : vector<4x1xf32>
    %13 = math.exp %12 : vector<4x1xf32>
    %cst_10 = arith.constant 1.000000e+00 : f32
    %14 = vector.broadcast %cst_10 : f32 to vector<4x1xf32>
    %15 = arith.addf %14, %13 : vector<4x1xf32>
    %16 = arith.divf %14, %15 : vector<4x1xf32>
    %c0_11 = arith.constant 0 : index
    %c0_12 = arith.constant 0 : index
    %c0_13 = arith.constant 0 : index
    %17 = vector.load %arg1[%c0_11, %c0_12, %c0_13] : memref<1x4x256xf32, #tpu.memory_space<vmem>>, vector<1x4x256xf32>
    %18 = vector.shape_cast %17 : vector<1x4x256xf32> to vector<4x256xf32>
    %19 = vector.broadcast %16 : vector<4x1xf32> to vector<4x256xf32>
    %20 = arith.mulf %18, %19 : vector<4x256xf32>
    %c0_14 = arith.constant 0 : index
    %c0_15 = arith.constant 0 : index
    %c0_16 = arith.constant 0 : index
    %21 = vector.load %arg4[%c0_14, %c0_15, %c0_16] : memref<1x4x256xf32, #tpu.memory_space<vmem>>, vector<1x4x256xf32>
    %22 = vector.shape_cast %21 : vector<1x4x256xf32> to vector<4x256xf32>
    %23 = vector.shape_cast %20 : vector<4x256xf32> to vector<1x4x256xf32>
    tpu.vector_store %arg4[%c0_14, %c0_15, %c0_16], %23 {strides = array<i32>} : memref<1x4x256xf32, #tpu.memory_space<vmem>>, vector<1x4x256xf32>,
    return
  }
  func.func @transform_0(%arg0: i32) -> (i32, i32, i32) {
    %c0_i32 = arith.constant 0 : i32
    %c0_i32_0 = arith.constant 0 : i32
    %c0_i32_1 = arith.constant 0 : i32
    return %arg0, %c0_i32, %c0_i32_0 : i32, i32, i32
  }
  func.func @transform_1(%arg0: i32) -> (i32, i32) {
    %c0_i32 = arith.constant 0 : i32
    %c0_i32_0 = arith.constant 0 : i32
    %c0_i32_1 = arith.constant 0 : i32
    return %c0_i32, %c0_i32_0 : i32, i32
  }
  func.func @transform_2(%arg0: i32) -> (i32, i32) {
    %c0_i32 = arith.constant 0 : i32
    %c0_i32_0 = arith.constant 0 : i32
    %c0_i32_1 = arith.constant 0 : i32
    return %c0_i32, %c0_i32_0 : i32, i32
  }
  func.func @transform_3(%arg0: i32) -> (i32, i32, i32) {
    %c0_i32 = arith.constant 0 : i32
    %c0_i32_0 = arith.constant 0 : i32
    %c0_i32_1 = arith.constant 0 : i32
    return %arg0, %c0_i32, %c0_i32_0 : i32, i32, i32
  }
}

</mosaic_0001>

<bundles_post_ra>
// kernel: tpu_custom_call.1
= control target key start
LH: loop header
LB: loop body
LE: loop exit
PB: predicated region body
PF: predicated region fallthrough
CT: control target
= control target key end

     0   :  { %8 = vsyncpa [#allocation3], 0  ;;  %s727_s0 = inlined_call_operand.hbm [shape: f32[2,4,256], index: 0, kind: input, shape index: {}]   ;;  %s728_s1 = inlined_call_operand.vmem [shape: f32[2,4], index: 1, kind: input, shape index: {}]   ;;  %s729_s2 = inlined_call_operand.vmem [shape: f32[4,2], index: 2, kind: input, shape index: {}]   ;;  %s730_s3 = inlined_call_operand.hbm [shape: f32[2,4,256], index: 3, kind: output, shape index: {}]  }
   0x1   :  { %10 = vsyncpa [#allocation3 + $0x1], 0 }
   0x2   :  { %11 = vsyncpa [#allocation4], 0 }
   0x3   :  { %13 = vsyncpa [#allocation4 + $0x1], 0  ;;  %s583_s12 = smov 0   ;;  %s585_s13 = smov 0  }
   0x4   :  { %s587_s14 = smov 0   ;;  %s589_s15 = smov 0  }
   0x5 LB: > { %s604_s16 = sadd.s32 4294967295, %s558_s15   ;;  %s385_s17 = sadd.s32 4294967294, %s558_s15   ;;  %s558_s15 = sphi %s589_s15, %s740_s15   ;;  %s554_s14 = sphi %s587_s14, %s739_s14   ;;  %s550_s13 = sphi %s585_s13, %s738_s13   ;;  %s546_s12 = sphi %s583_s12, %s737_s12  }
   0x6   : > { %s608_s18 = sadd.s32 1, %s558_s15   ;;  %s26_s19 = sadd.s32 1, %s554_s14 }
   0x7   : > { %s23_s20 = ssub.s32 %s558_s15, %s608_s18  ;;  %p33_p0 = scmp.ne.s32.totalorder %s554_s14, %s550_s13 }
   0x8   : > { %p24_p1 = scmp.eq.s32.totalorder %s23_s20, 0  ;;  %p34_p2 = scmp.eq.s32.totalorder %s558_s15, 0 }
   0x9   : > { %p39_p3 = scmp.ne.s32.totalorder %s550_s13, %s546_s12  ;;  %p40_p4 = scmp.eq.s32.totalorder %s604_s16, 0 }
   0xa   : > { %s620_s21 = scalar_select %p24_p1, %s554_s14, %s26_s19  }
   0xb   : > { %p622_p5 = por %p34_p2, %p33_p0  ;;  %p626_p6 = por %p40_p4, %p39_p3 }
   0xc   : > { %p105_p7 = scmp.eq.s32.totalorder %s604_s16, 1  ;;  %p111_p8 = scmp.eq.s32.totalorder %s385_s17, 1 }
   0xd   : > { %p418_p10 = scmp.lt.s32.totalorder %s558_s15, 2  ;;  %s137_s26 = sand.u32 1, %s554_s14  }
   0xe   : > { %p633_p11 = por %p105_p7, %p33_p0  ;;  %p637_p12 = por %p111_p8, %p39_p3 }
   0xf   : > { %s404_s27 = sshll.u32 %s558_s15, 3  ;;  %s388_s28 = sshll.u32 %s137_s26, 3 }
  0x10   : > { %s146_s4 = scalar_lea.hbm %s727_s0, %s404_s27  ;;  %s141_s6 = scalar_lea.vmem [#allocation2], %s388_s28 }
  0x11   : > { %s148_s5 = sshll.u32 %s146_s4, 4  ;;  %s150_s7 = sshll.u32 %s141_s6, 4  ;;  %s149_s5 = int_to_ptr.hbm [resolvable:$true] %s148_s5  ;;  %s151_s7 = int_to_ptr.vmem [resolvable:$true] %s150_s7 }
  0x12   : > { %p648_p13 = pnand %p418_p10, %p622_p5  ;;  %p391_p0 = scmp.ge.s32.totalorder %s558_s15, 1 }
  0x13   : > { %p155_p1 = scmp.lt.s32.totalorder %s558_s15, 3  ;;  %s138_s9 = scalar_lea.sflag [#allocation3], %s137_s26 }
  0x14   : > { %s462_s10 = sshra.s32 %s149_s5, 4  ;;  %p466_p3 = pneg %p648_p13  ;;  %s463_s10 = int_to_ptr.hbm [resolvable:$true] %s462_s10 }
  0x15   : > { %s464_s11 = scalar_lea.hbm %s463_s10, 8  ;;  %s469_s20 = scalar_lea.hbm %s727_s0, 16 }
  0x16   : > { %p465_p2 = scmp.ne.s32.totalorder %s463_s10, %s464_s11  ;;  %p470_p5 = scmp.lt.s32.totalorder %s463_s10, %s727_s0 }
  0x17   : > { %p471_p8 = scmp.lt.s32.totalorder %s469_s20, %s464_s11 }
  0x18   : > { %p467_p4 = pnand %p466_p3, %p465_p2 }
  0x19   : > { %p472_p10 = por %p471_p8, %p470_p5 }
  0x1a   : > { %p468_p7 = pneg %p467_p4 }
  0x1c   : > { %p473_p9 = pnand %p472_p10, %p468_p7 }
  0x1e   : > { %476 = shalt.err (!%p473_p9)
}
  0x1f   : > { %413 = dma.hbm_to_vmem [thread:$0]  (!%p648_p13), %s149_s5, 128, %s151_s7, %s138_s9  }
  0x20   : > { %p156_p2 = pnand %p391_p0, %p155_p1 }
  0x21   : > { %s669_s26 = sand.u32 (!%p156_p2), 1, %s550_s13  }
  0x22   : > { %159 = sbr.rel (%p156_p2) target bundleno = 576 (0x240), region = 32  ;;  %s392_s28 = sshll.u32 (!%p156_p2), %s669_s26, 3 }
  0x23   : > { %s162_s29 = scalar_lea.sflag (!%p156_p2), [#allocation3], %s669_s26  ;;  %s165_s30 = scalar_lea.vmem (!%p156_p2), [#allocation2], %s392_s28 }
  0x27   : > { %537 = dma.done.wait (%p626_p6), %s162_s29, 128  }
  0x28   : > { %539 = vsyncadd (%p626_p6), %s162_s29, 4294967168  ;;  %v679_v0 = vld [vmem:[%s165_s30] sm:$0xff]  ;;  %vm198_vm0 = vcmask 1043456   ;;  %v560_v6 = vmov 256.0   ;;  %v189_v15 = vld [vmem:[%s728_s1] sm:$0x3] }
  0x29   : > { %193 = vst [vmem:[#allocation1] ss:$2 sm:$0xff] %v679_v0  ;;  %456 = vrcp.f32 %v560_v6  ;;  %vm212_vm2 = vcmask 31744   ;;  %vm244_vm3 = vcmask 1041408   ;;  %v190_v18 = vld [vmem:[%s729_s2] sm:$0xf] }
  0x2a   : > { %vm240_vm4 = vcmask 15360   ;;  %v561_v19 = vmov 0   ;;  %v562_v34 = vmov 839922192   ;;  %s405_s7 = sshll.u32 %s604_s16, 3  ;;  %s188_s11 = scalar_lea.vmem [#allocation5], %s392_s28 }
  0x2b   : > { %455 = vset.pattern.permute.xlu0 %v561_v19  ;;  %v292_v35 = vunpack.c.l.s4 %v562_v34  ;;  %s310_s10 = scalar_lea.hbm %s730_s3, %s405_s7  ;;  %s312_s17 = sshll.u32 %s188_s11, 4  ;;  %s313_s17 = int_to_ptr.vmem [resolvable:$true] %s312_s17 }
  0x2c   : > { %s314_s19 = sshll.u32 %s310_s10, 4  ;;  %s299_s20 = scalar_lea.sflag [#allocation4], %s669_s26  ;;  %s315_s19 = int_to_ptr.hbm [resolvable:$true] %s314_s19 }
  0x2d   : > { %v293_v36 = vunpack.c.0.s8 %v292_v35  ;;  %s506_s22 = sshra.s32 %s315_s19, 4  ;;  %s512_s28 = scalar_lea.hbm %s730_s3, 16  ;;  %s507_s22 = int_to_ptr.hbm [resolvable:$true] %s506_s22 }
  0x2e   : > { %s508_s16 = scalar_lea.hbm %s507_s22, 8  ;;  %p513_p0 = scmp.lt.s32.totalorder %s507_s22, %s730_s3 }
  0x2f   : > { %v457_v7 = vpop.eup %456  ;;  %p509_p6 = scmp.ne.s32.totalorder %s507_s22, %s508_s16  ;;  %p514_p1 = scmp.lt.s32.totalorder %s512_s28, %s508_s16 }
  0x30   : > { %v194_v1 = vld.sshfl [vmem:[#allocation1] sm:$0xff pattern:$0x75316420]  ;;  %v195_v2 = vld.sshfl [vmem:[#allocation1 + $0x8] sm:$0xff pattern:$0x75316420]  ;;  %vm209_vm1 = vweird.f32 %v457_v7 }
  0x31   : > { %v199_v3 = vsel %vm198_vm0, %v194_v1, 0.0  ;;  %v200_v4 = vsel %vm198_vm0, %v195_v2, 0.0  ;;  %v205_v8 = vmul.f32 256.0, %v457_v7  ;;  %p510_p9 = pnand %p509_p6, %p633_p11  ;;  %p515_p3 = por %p514_p1, %p513_p0 }
  0x32   : > { %v201_v5 = vadd.f32 %v200_v4, %v199_v3 }
  0x33   : > { %v206_v9 = vsub.f32 1.0, %v205_v8  ;;  %p511_p13 = pneg %p510_p9 }
  0x34   : > { %202 = vadd.xlane.f32.xlu0 %v201_v5 }
  0x35   : > { %v207_v10 = vmul.f32 %v457_v7, %v206_v9  ;;  %p516_p4 = pnand %p515_p3, %p511_p13 }
  0x37   : > { %v208_v11 = vadd.f32 %v457_v7, %v207_v10 }
  0x39   : > { %v210_v12 = vsel %vm209_vm1, %v457_v7, %v208_v11 }
  0xa7   : > { %v203_v13 = vpop.xlane.xlu0 %202 }
  0xa8   : > { %v211_v14 = vmul.f32 %v210_v12, %v203_v13 }
  0xaa   : > { %394 = vmatpush.msk.msra.mxu0 %vm198_vm0, %v211_v14 }
  0xab   : > { %395 = vmatmul.msk.f32.vlgmr.msra.gmra.mxu0 %vm212_vm2, %v189_v15 }
 0x128   : > { %v236_v16 = vpop.f32.mrf.mxu0 }
 0x129   : > { %v239_v17 = vmax.f32 %v236_v16, 0.0 }
 0x12b   : > { %396 = vmatpush.msk.msra.mxu1 %vm244_vm3, %v239_v17 }
 0x12c   : > { %397 = vmatmul.msk.f32.vlgmr.msra.gmra.mxu1 %vm240_vm4, %v190_v18 }
 0x1a9   : > { %v265_v20 = vpop.f32.mrf.mxu1 }
 0x1aa   : > { %v398_v21 = vmul.f32 -1.442695, %v265_v20 }
 0x1ac   : > { %458 = vpow2.f32 %v398_v21 }
 0x1b2   : > { %v459_v22 = vpop.eup %458 }
 0x1b3   : > { %v271_v23 = vadd.f32 1.0, %v459_v22 }
 0x1b5   : > { %460 = vrcp.f32 %v271_v23  ;;  %v283_v27 = vand.u32 2147483648, %v271_v23  ;;  %v281_v29 = vand.u32 2147483647, %v271_v23  ;;  %vm277_vm6 = vweird.f32 %v271_v23 }
 0x1b7   : > { %v284_v31 = vor.u32 1.1754944e-38, %v283_v27  ;;  %vm282_vm8 = vcmp.eq.f32.partialorder %v281_v29, 8.507059e+37 }
 0x1bb   : > { %v461_v24 = vpop.eup %460 }
 0x1bc   : > { %v273_v25 = vmul.f32 %v461_v24, %v271_v23  ;;  %vm278_vm5 = vweird.f32 %v461_v24 }
 0x1bd   : > { %vm279_vm7 = vmor %vm277_vm6, %vm278_vm5 }
 0x1be   : > { %v274_v26 = vsub.f32 1.0, %v273_v25 }
 0x1c0   : > { %v275_v28 = vmul.f32 %v461_v24, %v274_v26 }
 0x1c2   : > { %v276_v30 = vadd.f32 %v461_v24, %v275_v28 }
 0x1c4   : > { %v280_v32 = vsel %vm279_vm7, %v461_v24, %v276_v30 }
 0x1c5   : > { %v285_v33 = vsel %vm282_vm8, %v284_v31, %v280_v32 }
 0x1c6   : > { %289 = vperm.xlu0 %455, %v285_v33  }
 0x238   : > { %v290_v37 = vpop.permute.xlu0 %289 }
 0x239   : > { %v294_v38 = vperm.slane %v290_v37, %v293_v36 }
 0x23b   : > { %v296_v39 = vmul.f32 %v294_v38, %v679_v0 }
 0x23d   : > { %297 = vst [vmem:[%s188_s11] sm:$0xff] %v296_v39 }
 0x23e   : > { %519 = shalt.err (!%p516_p4)
}
 0x23f   : > { %408 = dma.vmem_to_hbm [thread:$0]  (%p633_p11), %s313_s17, 128, %s315_s19, %s299_s20  }
 0x240 PF: > { %s326_s26 = sand.u32 1, %s546_s12   ;;  %p736_p7 = scmp.ge.s32.totalorder %s558_s15, 2 }
 0x241   : > { %s327_s4 = scalar_lea.sflag [#allocation4], %s326_s26 }
 0x242   : > { %p415_p5 = pnand %p736_p7, %p637_p12 }
 0x244   : > { %p416_p8 = pneg %p415_p5 }
 0x246   : > { %541 = dma.done.wait (%p416_p8), %s327_s4, 128  }
 0x247   : > { %543 = vsyncadd (%p416_p8), %s327_s4, 4294967168  ;;  %p16_p10 = scmp.ge.s32.totalorder %s608_s18, 4   ;;  %s737_s12 = smov %s550_s13 }
 0x248   : > { %s738_s13 = smov %s554_s14  ;;  %s739_s14 = smov %s620_s21 }
 0x249   : > { %s740_s15 = smov %s608_s18  ;;  %18 = sbr.rel (!%p16_p10) target bundleno = 5 (0x5), region = 77 }
 0x24e   :  { %333 = vsyncpa [#allocation3], 1 }
 0x24f   :  { %335 = vsyncpa [#allocation3 + $0x1], 1 }
 0x250   :  { %336 = vsyncpa [#allocation4], 1 }
 0x251   :  { %338 = vsyncpa [#allocation4 + $0x1], 1 }

// kernel: tpu_custom_call.1
= control target key start
LH: loop header
LB: loop body
LE: loop exit
PB: predicated region body
PF: predicated region fallthrough
CT: control target
= control target key end

     0   :  { %8 = vsyncpa [#allocation3], 0  ;;  %s727_s0 = inlined_call_operand.hbm [shape: f32[2,4,256], index: 0, kind: input, shape index: {}]   ;;  %s728_s1 = inlined_call_operand.vmem [shape: f32[2,4], index: 1, kind: input, shape index: {}]   ;;  %s729_s2 = inlined_call_operand.vmem [shape: f32[4,2], index: 2, kind: input, shape index: {}]   ;;  %s730_s3 = inlined_call_operand.hbm [shape: f32[2,4,256], index: 3, kind: output, shape index: {}]  }
   0x1   :  { %10 = vsyncpa [#allocation3 + $0x1], 0 }
   0x2   :  { %11 = vsyncpa [#allocation4], 0 }
   0x3   :  { %13 = vsyncpa [#allocation4 + $0x1], 0  ;;  %s583_s12 = smov 0   ;;  %s585_s13 = smov 0  }
   0x4   :  { %s587_s14 = smov 0   ;;  %s589_s15 = smov 0  }
   0x5 LB: > { %s604_s16 = sadd.s32 4294967295, %s558_s15   ;;  %s385_s17 = sadd.s32 4294967294, %s558_s15   ;;  %s558_s15 = sphi %s589_s15, %s740_s15   ;;  %s554_s14 = sphi %s587_s14, %s739_s14   ;;  %s550_s13 = sphi %s585_s13, %s738_s13   ;;  %s546_s12 = sphi %s583_s12, %s737_s12  }
   0x6   : > { %s608_s18 = sadd.s32 1, %s558_s15   ;;  %s26_s19 = sadd.s32 1, %s554_s14 }
   0x7   : > { %s23_s20 = ssub.s32 %s558_s15, %s608_s18  ;;  %p33_p0 = scmp.ne.s32.totalorder %s554_s14, %s550_s13 }
   0x8   : > { %p24_p1 = scmp.eq.s32.totalorder %s23_s20, 0  ;;  %p34_p2 = scmp.eq.s32.totalorder %s558_s15, 0 }
   0x9   : > { %p39_p3 = scmp.ne.s32.totalorder %s550_s13, %s546_s12  ;;  %p40_p4 = scmp.eq.s32.totalorder %s604_s16, 0 }
   0xa   : > { %s620_s21 = scalar_select %p24_p1, %s554_s14, %s26_s19  }
   0xb   : > { %p622_p5 = por %p34_p2, %p33_p0  ;;  %p626_p6 = por %p40_p4, %p39_p3 }
   0xc   : > { %p105_p7 = scmp.eq.s32.totalorder %s604_s16, 1  ;;  %p111_p8 = scmp.eq.s32.totalorder %s385_s17, 1 }
   0xd   : > { %p418_p10 = scmp.lt.s32.totalorder %s558_s15, 2  ;;  %s137_s26 = sand.u32 1, %s554_s14  }
   0xe   : > { %p633_p11 = por %p105_p7, %p33_p0  ;;  %p637_p12 = por %p111_p8, %p39_p3 }
   0xf   : > { %s404_s27 = sshll.u32 %s558_s15, 3  ;;  %s388_s28 = sshll.u32 %s137_s26, 3 }
  0x10   : > { %s146_s4 = scalar_lea.hbm %s727_s0, %s404_s27  ;;  %s141_s6 = scalar_lea.vmem [#allocation2], %s388_s28 }
  0x11   : > { %s148_s5 = sshll.u32 %s146_s4, 4  ;;  %s150_s7 = sshll.u32 %s141_s6, 4  ;;  %s149_s5 = int_to_ptr.hbm [resolvable:$true] %s148_s5  ;;  %s151_s7 = int_to_ptr.vmem [resolvable:$true] %s150_s7 }
  0x12   : > { %p648_p13 = pnand %p418_p10, %p622_p5  ;;  %p391_p0 = scmp.ge.s32.totalorder %s558_s15, 1 }
  0x13   : > { %p155_p1 = scmp.lt.s32.totalorder %s558_s15, 3  ;;  %s138_s9 = scalar_lea.sflag [#allocation3], %s137_s26 }
  0x14   : > { %s462_s10 = sshra.s32 %s149_s5, 4  ;;  %p466_p3 = pneg %p648_p13  ;;  %s463_s10 = int_to_ptr.hbm [resolvable:$true] %s462_s10 }
  0x15   : > { %s464_s11 = scalar_lea.hbm %s463_s10, 8  ;;  %s469_s20 = scalar_lea.hbm %s727_s0, 16 }
  0x16   : > { %p465_p2 = scmp.ne.s32.totalorder %s463_s10, %s464_s11  ;;  %p470_p5 = scmp.lt.s32.totalorder %s463_s10, %s727_s0 }
  0x17   : > { %p471_p8 = scmp.lt.s32.totalorder %s469_s20, %s464_s11 }
  0x18   : > { %p467_p4 = pnand %p466_p3, %p465_p2 }
  0x19   : > { %p472_p10 = por %p471_p8, %p470_p5 }
  0x1a   : > { %p468_p7 = pneg %p467_p4 }
  0x1c   : > { %p473_p9 = pnand %p472_p10, %p468_p7 }
  0x1e   : > { %476 = shalt.err (!%p473_p9)
}
  0x1f   : > { %413 = dma.hbm_to_vmem [thread:$0]  (!%p648_p13), %s149_s5, 128, %s151_s7, %s138_s9  }
  0x20   : > { %p156_p2 = pnand %p391_p0, %p155_p1 }
  0x21   : > { %s669_s26 = sand.u32 (!%p156_p2), 1, %s550_s13  }
  0x22   : > { %159 = sbr.rel (%p156_p2) target bundleno = 576 (0x240), region = 32  ;;  %s392_s28 = sshll.u32 (!%p156_p2), %s669_s26, 3 }
  0x23   : > { %s162_s29 = scalar_lea.sflag (!%p156_p2), [#allocation3], %s669_s26  ;;  %s165_s30 = scalar_lea.vmem (!%p156_p2), [#allocation2], %s392_s28 }
  0x27   : > { %537 = dma.done.wait (%p626_p6), %s162_s29, 128  }
  0x28   : > { %539 = vsyncadd (%p626_p6), %s162_s29, 4294967168  ;;  %v679_v0 = vld [vmem:[%s165_s30] sm:$0xff]  ;;  %vm198_vm0 = vcmask 1043456   ;;  %v560_v6 = vmov 256.0   ;;  %v189_v15 = vld [vmem:[%s728_s1] sm:$0x3] }
  0x29   : > { %193 = vst [vmem:[#allocation1] ss:$2 sm:$0xff] %v679_v0  ;;  %456 = vrcp.f32 %v560_v6  ;;  %vm212_vm2 = vcmask 31744   ;;  %vm244_vm3 = vcmask 1041408   ;;  %v190_v18 = vld [vmem:[%s729_s2] sm:$0xf] }
  0x2a   : > { %vm240_vm4 = vcmask 15360   ;;  %v561_v19 = vmov 0   ;;  %v562_v34 = vmov 839922192   ;;  %s405_s7 = sshll.u32 %s604_s16, 3  ;;  %s188_s11 = scalar_lea.vmem [#allocation5], %s392_s28 }
  0x2b   : > { %455 = vset.pattern.permute.xlu0 %v561_v19  ;;  %v292_v35 = vunpack.c.l.s4 %v562_v34  ;;  %s310_s10 = scalar_lea.hbm %s730_s3, %s405_s7  ;;  %s312_s17 = sshll.u32 %s188_s11, 4  ;;  %s313_s17 = int_to_ptr.vmem [resolvable:$true] %s312_s17 }
  0x2c   : > { %s314_s19 = sshll.u32 %s310_s10, 4  ;;  %s299_s20 = scalar_lea.sflag [#allocation4], %s669_s26  ;;  %s315_s19 = int_to_ptr.hbm [resolvable:$true] %s314_s19 }
  0x2d   : > { %v293_v36 = vunpack.c.0.s8 %v292_v35  ;;  %s506_s22 = sshra.s32 %s315_s19, 4  ;;  %s512_s28 = scalar_lea.hbm %s730_s3, 16  ;;  %s507_s22 = int_to_ptr.hbm [resolvable:$true] %s506_s22 }
  0x2e   : > { %s508_s16 = scalar_lea.hbm %s507_s22, 8  ;;  %p513_p0 = scmp.lt.s32.totalorder %s507_s22, %s730_s3 }
  0x2f   : > { %v457_v7 = vpop.eup %456  ;;  %p509_p6 = scmp.ne.s32.totalorder %s507_s22, %s508_s16  ;;  %p514_p1 = scmp.lt.s32.totalorder %s512_s28, %s508_s16 }
  0x30   : > { %v194_v1 = vld.sshfl [vmem:[#allocation1] sm:$0xff pattern:$0x75316420]  ;;  %v195_v2 = vld.sshfl [vmem:[#allocation1 + $0x8] sm:$0xff pattern:$0x75316420]  ;;  %vm209_vm1 = vweird.f32 %v457_v7 }
  0x31   : > { %v199_v3 = vsel %vm198_vm0, %v194_v1, 0.0  ;;  %v200_v4 = vsel %vm198_vm0, %v195_v2, 0.0  ;;  %v205_v8 = vmul.f32 256.0, %v457_v7  ;;  %p510_p9 = pnand %p509_p6, %p633_p11  ;;  %p515_p3 = por %p514_p1, %p513_p0 }
  0x32   : > { %v201_v5 = vadd.f32 %v200_v4, %v199_v3 }
  0x33   : > { %v206_v9 = vsub.f32 1.0, %v205_v8  ;;  %p511_p13 = pneg %p510_p9 }
  0x34   : > { %202 = vadd.xlane.f32.xlu0 %v201_v5 }
  0x35   : > { %v207_v10 = vmul.f32 %v457_v7, %v206_v9  ;;  %p516_p4 = pnand %p515_p3, %p511_p13 }
  0x37   : > { %v208_v11 = vadd.f32 %v457_v7, %v207_v10 }
  0x39   : > { %v210_v12 = vsel %vm209_vm1, %v457_v7, %v208_v11 }
  0xa7   : > { %v203_v13 = vpop.xlane.xlu0 %202 }
  0xa8   : > { %v211_v14 = vmul.f32 %v210_v12, %v203_v13 }
  0xaa   : > { %394 = vmatpush.msk.msra.mxu0 %vm198_vm0, %v211_v14 }
  0xab   : > { %395 = vmatmul.msk.f32.vlgmr.msra.gmra.mxu0 %vm212_vm2, %v189_v15 }
 0x128   : > { %v236_v16 = vpop.f32.mrf.mxu0 }
 0x129   : > { %v239_v17 = vmax.f32 %v236_v16, 0.0 }
 0x12b   : > { %396 = vmatpush.msk.msra.mxu1 %vm244_vm3, %v239_v17 }
 0x12c   : > { %397 = vmatmul.msk.f32.vlgmr.msra.gmra.mxu1 %vm240_vm4, %v190_v18 }
 0x1a9   : > { %v265_v20 = vpop.f32.mrf.mxu1 }
 0x1aa   : > { %v398_v21 = vmul.f32 -1.442695, %v265_v20 }
 0x1ac   : > { %458 = vpow2.f32 %v398_v21 }
 0x1b2   : > { %v459_v22 = vpop.eup %458 }
 0x1b3   : > { %v271_v23 = vadd.f32 1.0, %v459_v22 }
 0x1b5   : > { %460 = vrcp.f32 %v271_v23  ;;  %v283_v27 = vand.u32 2147483648, %v271_v23  ;;  %v281_v29 = vand.u32 2147483647, %v271_v23  ;;  %vm277_vm6 = vweird.f32 %v271_v23 }
 0x1b7   : > { %v284_v31 = vor.u32 1.1754944e-38, %v283_v27  ;;  %vm282_vm8 = vcmp.eq.f32.partialorder %v281_v29, 8.507059e+37 }
 0x1bb   : > { %v461_v24 = vpop.eup %460 }
 0x1bc   : > { %v273_v25 = vmul.f32 %v461_v24, %v271_v23  ;;  %vm278_vm5 = vweird.f32 %v461_v24 }
 0x1bd   : > { %vm279_vm7 = vmor %vm277_vm6, %vm278_vm5 }
 0x1be   : > { %v274_v26 = vsub.f32 1.0, %v273_v25 }
 0x1c0   : > { %v275_v28 = vmul.f32 %v461_v24, %v274_v26 }
 0x1c2   : > { %v276_v30 = vadd.f32 %v461_v24, %v275_v28 }
 0x1c4   : > { %v280_v32 = vsel %vm279_vm7, %v461_v24, %v276_v30 }
 0x1c5   : > { %v285_v33 = vsel %vm282_vm8, %v284_v31, %v280_v32 }
 0x1c6   : > { %289 = vperm.xlu0 %455, %v285_v33  }
 0x238   : > { %v290_v37 = vpop.permute.xlu0 %289 }
 0x239   : > { %v294_v38 = vperm.slane %v290_v37, %v293_v36 }
 0x23b   : > { %v296_v39 = vmul.f32 %v294_v38, %v679_v0 }
 0x23d   : > { %297 = vst [vmem:[%s188_s11] sm:$0xff] %v296_v39 }
 0x23e   : > { %519 = shalt.err (!%p516_p4)
}
 0x23f   : > { %408 = dma.vmem_to_hbm [thread:$0]  (%p633_p11), %s313_s17, 128, %s315_s19, %s299_s20  }
 0x240 PF: > { %s326_s26 = sand.u32 1, %s546_s12   ;;  %p736_p7 = scmp.ge.s32.totalorder %s558_s15, 2 }
 0x241   : > { %s327_s4 = scalar_lea.sflag [#allocation4], %s326_s26 }
 0x242   : > { %p415_p5 = pnand %p736_p7, %p637_p12 }
 0x244   : > { %p416_p8 = pneg %p415_p5 }
 0x246   : > { %541 = dma.done.wait (%p416_p8), %s327_s4, 128  }
 0x247   : > { %543 = vsyncadd (%p416_p8), %s327_s4, 4294967168  ;;  %p16_p10 = scmp.ge.s32.totalorder %s608_s18, 4   ;;  %s737_s12 = smov %s550_s13 }
 0x248   : > { %s738_s13 = smov %s554_s14  ;;  %s739_s14 = smov %s620_s21 }
 0x249   : > { %s740_s15 = smov %s608_s18  ;;  %18 = sbr.rel (!%p16_p10) target bundleno = 5 (0x5), region = 77 }
 0x24e   :  { %333 = vsyncpa [#allocation3], 1 }
 0x24f   :  { %335 = vsyncpa [#allocation3 + $0x1], 1 }
 0x250   :  { %336 = vsyncpa [#allocation4], 1 }
 0x251   :  { %338 = vsyncpa [#allocation4 + $0x1], 1 }

</bundles_post_ra>
